<compile_context>
chip_gen: v5e
topology: v5e:2x2
jax: 0.10.0
libtpu: 0.0.40
codegen_flags: <defaults>
</compile_context>

<pallas_src>
import jax
import jax.numpy as jnp
from jax.experimental import pallas as pl
from jax.experimental.pallas import tpu as pltpu

# Synthetic hyperparameters (small, consistent with the module's forward).
EMBEDDING_DIM = 32       # input_dim
HIDDEN_DIM = 32          # hidden_dim
VOXEL_RESOLUTION = 8     # voxel_resolution -> output dim = 8**3 = 512
LN_EPS = 1e-5
_LANE = 128              # TPU lane width


def _round_up(n, m):
    return ((n + m - 1) // m) * m


def _layernorm_true_width(h, gamma, beta, true_width):
    """LayerNorm over the last dim where `h` may carry zero-padded lanes.

    Uses the true divisor (sum / true_width) and var = E[h^2] - mu^2.  Padded
    lanes of `h` are exactly zero (zero weight columns + zero bias + ReLU) and
    gamma/beta are zero-padded, so padded lanes remain zero and the result
    matches PyTorch nn.LayerNorm(true_width) (biased variance, eps inside rsqrt).
    """
    inv_n = 1.0 / float(true_width)
    mu = jnp.sum(h, axis=-1, keepdims=True) * inv_n
    ex2 = jnp.sum(h * h, axis=-1, keepdims=True) * inv_n
    var = ex2 - mu * mu
    return (h - mu) * jax.lax.rsqrt(var + LN_EPS) * gamma + beta


def _make_kernel(true_widths, slot_widths, slot_offs):
    H1, H2, H4 = true_widths

    def kernel(x_ref, w1_ref, w2_ref, w3_ref, w4_ref, vec_ref, out_ref):
        def vec(i):
            # Static, lane-aligned slice of the packed f32 bias/gamma/beta vector.
            return vec_ref[:, slot_offs[i]:slot_offs[i] + slot_widths[i]]

        b1, g1, be1, b2, g2, be2, b3, g3, be3, b4 = (vec(i) for i in range(10))

        x = x_ref[...]                                           # (TB, 32) bf16
        # Linear -> ReLU -> LayerNorm (x3); bf16 MXU operands, f32 accumulation.
        h = jnp.dot(x, w1_ref[...], preferred_element_type=jnp.float32) + b1
        h = jnp.maximum(h, 0.0)
        h = _layernorm_true_width(h, g1, be1, H1)

        h = jnp.dot(h.astype(jnp.bfloat16), w2_ref[...],
                    preferred_element_type=jnp.float32) + b2
        h = jnp.maximum(h, 0.0)
        h = _layernorm_true_width(h, g2, be2, H2)

        h = jnp.dot(h.astype(jnp.bfloat16), w3_ref[...],
                    preferred_element_type=jnp.float32) + b3
        h = jnp.maximum(h, 0.0)
        h = _layernorm_true_width(h, g3, be3, H4)

        # Final Linear -> Sigmoid.  sigmoid(h) = 0.5*(tanh(h/2)+1): one EUP
        # transcendental, no f32 divide on the VPU; store as bf16.
        h = jnp.dot(h.astype(jnp.bfloat16), w4_ref[...],
                    preferred_element_type=jnp.float32) + b4
        out_ref[...] = (0.5 * (jnp.tanh(0.5 * h) + 1.0)).astype(out_ref.dtype)

    return kernel


def init_params(key, input_dim=EMBEDDING_DIM, hidden_dim=HIDDEN_DIM,
                voxel_resolution=VOXEL_RESOLUTION):
    """Deterministic synthetic params mirroring the nn.Sequential shapes.

    Linear weights are created (out, in) like PyTorch, scaled uniform(-1/sqrt(in),
    1/sqrt(in)), then transposed to (in, out) for the kernel's x @ W convention.
    LayerNorm gamma=1, beta=0 (PyTorch defaults). Biases are stored as (1, dim).
    All params are f32; the kernel-side layout/casting happens in pack_params().
    """
    dims = [
        (input_dim, hidden_dim),
        (hidden_dim, hidden_dim * 2),
        (hidden_dim * 2, hidden_dim * 4),
        (hidden_dim * 4, voxel_resolution ** 3),
    ]
    params = []
    keys = jax.random.split(key, 2 * len(dims))
    for i, (din, dout) in enumerate(dims):
        bound = 1.0 / jnp.sqrt(float(din))
        w = jax.random.uniform(keys[2 * i], (dout, din), jnp.float32, -bound, bound)
        b = jax.random.uniform(keys[2 * i + 1], (dout,), jnp.float32, -bound, bound)
        params.append((w.T, b.reshape(1, dout)))          # (in, out), (1, out)
    ln_params = [
        (jnp.ones((1, hidden_dim), jnp.float32), jnp.zeros((1, hidden_dim), jnp.float32)),
        (jnp.ones((1, hidden_dim * 2), jnp.float32), jnp.zeros((1, hidden_dim * 2), jnp.float32)),
        (jnp.ones((1, hidden_dim * 4), jnp.float32), jnp.zeros((1, hidden_dim * 4), jnp.float32)),
    ]
    return params, ln_params


def pack_params(params, ln_params, hidden_dim=HIDDEN_DIM,
                voxel_resolution=VOXEL_RESOLUTION):
    """One-time parameter prep, hoisted out of the forward hot path.

    - Casts matmul weights to bf16 (halves weight DMA/VMEM, 2x MXU rate).
    - Zero-pads hidden widths up to a multiple of 128 lanes (lane-full ReLU/LN);
      padded weight columns/rows and bias/gamma/beta lanes are zero, so the math
      is identical when the kernel's LayerNorm uses the true divisor.
    - Packs the 10 tiny bias / gamma / beta vectors into one lane-aligned f32
      array -> one DMA instead of ten.
    """
    (w1, b1), (w2, b2), (w3, b3), (w4, b4) = params
    (g1, be1), (g2, be2), (g3, be3) = ln_params
    H1, H2, H4 = hidden_dim, 2 * hidden_dim, 4 * hidden_dim
    out_dim = voxel_resolution ** 3
    din = w1.shape[0]
    P1 = _round_up(H1, _LANE)
    P2 = _round_up(H2, _LANE)
    P3 = _round_up(H4, _LANE)

    bf = jnp.bfloat16
    w1_p = jnp.zeros((din, P1), bf).at[:, :H1].set(w1.astype(bf))
    w2_p = jnp.zeros((P1, P2), bf).at[:H1, :H2].set(w2.astype(bf))
    w3_p = jnp.zeros((P2, P3), bf).at[:H2, :H4].set(w3.astype(bf))
    w4_p = jnp.zeros((P3, out_dim), bf).at[:H4, :].set(w4.astype(bf))

    slot_widths = (P1, P1, P1, P2, P2, P2, P3, P3, P3, out_dim)
    slot_offs = tuple(int(sum(slot_widths[:i])) for i in range(10))
    vec_width = int(sum(slot_widths))
    small = (b1, g1, be1, b2, g2, be2, b3, g3, be3, b4)
    vec = jnp.zeros((1, vec_width), jnp.float32)
    for off, v in zip(slot_offs, small):
        vec = vec.at[:, off:off + v.shape[1]].set(v.astype(jnp.float32))

    meta = dict(true_widths=(H1, H2, H4), slot_widths=slot_widths,
                slot_offs=slot_offs, out_dim=out_dim, input_dim=din)
    return (w1_p, w2_p, w3_p, w4_p, vec), meta


def shape_generator_forward(x, packed, meta, voxel_resolution=VOXEL_RESOLUTION,
                            block_batch=1024):
    """Forward pass.  `packed, meta = pack_params(...)` must be built once at init."""
    w1_p, w2_p, w3_p, w4_p, vec = packed
    B, din = x.shape
    assert din == meta["input_dim"]
    R = voxel_resolution
    out_dim = meta["out_dim"]

    # Batch tiling: at least 2 grid steps whenever splittable (>= 16 rows) so the
    # "parallel" axis uses both TensorCores on v7x; tile size chosen so padding
    # waste is < 8 rows per tile (no near-full wasted tiles for unlucky B).
    n_blocks = max(pl.cdiv(B, block_batch), 2 if B >= 16 else 1)
    TB = _round_up(pl.cdiv(B, n_blocks), 8)
    B_pad = _round_up(B, TB)

    x_b = x.astype(jnp.bfloat16)
    if B_pad != B:
        x_b = jnp.pad(x_b, ((0, B_pad - B), (0, 0)))   # tiny batch-only pad

    kernel = _make_kernel(meta["true_widths"], meta["slot_widths"],
                          meta["slot_offs"])
    const = lambda i: (0, 0)          # params resident in VMEM across grid steps

    grid_spec = pltpu.PrefetchScalarGridSpec(
        num_scalar_prefetch=0,
        grid=(B_pad // TB,),
        in_specs=[
            pl.BlockSpec((TB, din), lambda i: (i, 0)),     # x tile (K=32 full dim)
            pl.BlockSpec(w1_p.shape, const),               # w1 (32, 128)
            pl.BlockSpec(w2_p.shape, const),               # w2 (128, 128)
            pl.BlockSpec(w3_p.shape, const),               # w3 (128, 128)
            pl.BlockSpec(w4_p.shape, const),               # w4 (128, 512)
            pl.BlockSpec(vec.shape, const),                # packed biases/LN
        ],
        out_specs=pl.BlockSpec((TB, out_dim), lambda i: (i, 0)),
    )

    voxels_flat = pl.pallas_call(
        kernel,
        out_shape=jax.ShapeDtypeStruct((B_pad, out_dim), jnp.bfloat16),
        grid_spec=grid_spec,
        compiler_params=pltpu.CompilerParams(
            dimension_semantics=("parallel",),             # dual-TC on v7x
            vmem_limit_bytes=48 * 1024 * 1024),            # headroom for big TB on v5e
    )(x_b, w1_p, w2_p, w3_p, w4_p, vec)

    # bf16 voxels (halves HBM writeback). Upcast with .astype(jnp.float32) in the
    # consumer if exact f32 storage is required downstream.
    return voxels_flat[:B].reshape(B, R, R, R)


def _reference_forward(x, params, ln_params, voxel_resolution=VOXEL_RESOLUTION,
                       cast_bf16=False):
    """Pure-JAX reference (PyTorch semantics). cast_bf16 mirrors the kernel's
    bf16 matmul operands."""
    cast = (lambda a: a.astype(jnp.bfloat16)) if cast_bf16 else (lambda a: a)
    h = x.astype(jnp.float32)
    for i, (w, b) in enumerate(params):
        h = jnp.dot(cast(h), cast(w), preferred_element_type=jnp.float32) + b
        if i < 3:
            h = jnp.maximum(h, 0.0)
            g, be = ln_params[i]
            mu = jnp.mean(h, axis=-1, keepdims=True)
            var = jnp.mean((h - mu) ** 2, axis=-1, keepdims=True)
            h = (h - mu) * jax.lax.rsqrt(var + LN_EPS) * g + be
        else:
            h = jax.nn.sigmoid(h)
    B = x.shape[0]
    R = voxel_resolution
    return h.reshape(B, R, R, R)


if __name__ == "__main__":
    key = jax.random.PRNGKey(0)
    k_params, k_x = jax.random.split(key)

    batch = 2
    x = jax.random.normal(k_x, (batch, EMBEDDING_DIM), jnp.float32)

    params, ln_params = init_params(k_params)
    packed, meta = pack_params(params, ln_params)      # one-time init-side prep

    voxels = shape_generator_forward(x, packed, meta)
    voxels = jax.block_until_ready(voxels)

    assert voxels.shape == (batch, VOXEL_RESOLUTION, VOXEL_RESOLUTION, VOXEL_RESOLUTION)
    v32 = voxels.astype(jnp.float32)

    # Matched-precision check (bf16 matmul operands like the kernel): tolerance is
    # dominated by the bf16 output quantization (~2e-3 near 0.5).
    ref_bf16 = _reference_forward(x, params, ln_params, cast_bf16=True)
    assert jnp.allclose(v32, ref_bf16, atol=1e-2, rtol=0.0), "mismatch vs bf16 reference"

    # Full-f32 (PyTorch-semantics) check: looser tolerance for bf16 matmuls+output.
    ref_f32 = _reference_forward(x, params, ln_params)
    assert jnp.allclose(v32, ref_f32, atol=4e-2, rtol=0.0), "mismatch vs f32 reference"

    print("KERNEL_OK")
</pallas_src>

<mosaic_0001>
module attributes {stable_mosaic.version = 11 : i64} {
  func.func @kernel(%arg0: i32, %arg1: memref<8x32xbf16, #tpu.memory_space<vmem>>, %arg2: memref<32x128xbf16, #tpu.memory_space<vmem>>, %arg3: memref<128x128xbf16, #tpu.memory_space<vmem>>, %arg4: memref<128x128xbf16, #tpu.memory_space<vmem>>, %arg5: memref<128x512xbf16, #tpu.memory_space<vmem>>, %arg6: memref<1x1664xf32, #tpu.memory_space<vmem>>, %arg7: memref<8x512xbf16, #tpu.memory_space<vmem>>) attributes {dimension_semantics = [#tpu.dimension_semantics<parallel>], iteration_bounds = array<i64: 1>, scalar_prefetch = 0 : i64, scratch_operands = 0 : i64, tpu.core_type = #tpu.core_type<tc>, window_params = [{transform_indices = @transform_0, window_bounds = array<i64: 8, 32>}, {pipeline_mode = #tpu.pipeline_mode<synchronous>, transform_indices = @transform_1, window_bounds = array<i64: 32, 128>}, {pipeline_mode = #tpu.pipeline_mode<synchronous>, transform_indices = @transform_2, window_bounds = array<i64: 128, 128>}, {pipeline_mode = #tpu.pipeline_mode<synchronous>, transform_indices = @transform_3, window_bounds = array<i64: 128, 128>}, {pipeline_mode = #tpu.pipeline_mode<synchronous>, transform_indices = @transform_4, window_bounds = array<i64: 128, 512>}, {pipeline_mode = #tpu.pipeline_mode<synchronous>, transform_indices = @transform_5, window_bounds = array<i64: 1, 1664>}, {transform_indices = @transform_6, window_bounds = array<i64: 8, 512>}]} {
    %c0 = arith.constant 0 : index
    %c0_0 = arith.constant 0 : index
    %0 = vector.load %arg6[%c0, %c0_0] : memref<1x1664xf32, #tpu.memory_space<vmem>>, vector<1x128xf32>
    %c0_1 = arith.constant 0 : index
    %c128 = arith.constant 128 : index
    %1 = vector.load %arg6[%c0_1, %c128] : memref<1x1664xf32, #tpu.memory_space<vmem>>, vector<1x128xf32>
    %c0_2 = arith.constant 0 : index
    %c256 = arith.constant 256 : index
    %2 = vector.load %arg6[%c0_2, %c256] : memref<1x1664xf32, #tpu.memory_space<vmem>>, vector<1x128xf32>
    %c0_3 = arith.constant 0 : index
    %c384 = arith.constant 384 : index
    %3 = vector.load %arg6[%c0_3, %c384] : memref<1x1664xf32, #tpu.memory_space<vmem>>, vector<1x128xf32>
    %c0_4 = arith.constant 0 : index
    %c512 = arith.constant 512 : index
    %4 = vector.load %arg6[%c0_4, %c512] : memref<1x1664xf32, #tpu.memory_space<vmem>>, vector<1x128xf32>
    %c0_5 = arith.constant 0 : index
    %c640 = arith.constant 640 : index
    %5 = vector.load %arg6[%c0_5, %c640] : memref<1x1664xf32, #tpu.memory_space<vmem>>, vector<1x128xf32>
    %c0_6 = arith.constant 0 : index
    %c768 = arith.constant 768 : index
    %6 = vector.load %arg6[%c0_6, %c768] : memref<1x1664xf32, #tpu.memory_space<vmem>>, vector<1x128xf32>
    %c0_7 = arith.constant 0 : index
    %c896 = arith.constant 896 : index
    %7 = vector.load %arg6[%c0_7, %c896] : memref<1x1664xf32, #tpu.memory_space<vmem>>, vector<1x128xf32>
    %c0_8 = arith.constant 0 : index
    %c1024 = arith.constant 1024 : index
    %8 = vector.load %arg6[%c0_8, %c1024] : memref<1x1664xf32, #tpu.memory_space<vmem>>, vector<1x128xf32>
    %c0_9 = arith.constant 0 : index
    %c1152 = arith.constant 1152 : index
    %9 = vector.load %arg6[%c0_9, %c1152] : memref<1x1664xf32, #tpu.memory_space<vmem>>, vector<1x512xf32>
    %c0_10 = arith.constant 0 : index
    %c0_11 = arith.constant 0 : index
    %10 = vector.load %arg1[%c0_10, %c0_11] : memref<8x32xbf16, #tpu.memory_space<vmem>>, vector<8x32xbf16>
    %c0_12 = arith.constant 0 : index
    %c0_13 = arith.constant 0 : index
    %11 = vector.load %arg2[%c0_12, %c0_13] : memref<32x128xbf16, #tpu.memory_space<vmem>>, vector<32x128xbf16>
    %cst = arith.constant dense<0.000000e+00> : vector<8x128xf32>
    %12 = tpu.matmul %10, %11, %cst {dimension_numbers = #tpu.dot_dimension_numbers<[1], [0], [0], [1], [0, 0, 1, 1], [], []>} : vector<8x32xbf16>, vector<32x128xbf16>, vector<8x128xf32> -> vector<8x128xf32>
    %13 = vector.broadcast %0 : vector<1x128xf32> to vector<8x128xf32>
    %14 = arith.addf %12, %13 : vector<8x128xf32>
    %cst_14 = arith.constant 0.000000e+00 : f32
    %15 = vector.broadcast %cst_14 : f32 to vector<8x128xf32>
    %16 = arith.maximumf %14, %15 : vector<8x128xf32>
    %cst_15 = arith.constant dense<0.000000e+00> : vector<8xf32>
    %17 = vector.multi_reduction <add>, %16, %cst_15 [1] : vector<8x128xf32> to vector<8xf32>
    %18 = vector.shape_cast %17 : vector<8xf32> to vector<8x1xf32>
    %cst_16 = arith.constant 3.125000e-02 : f32
    %19 = vector.broadcast %cst_16 : f32 to vector<8x1xf32>
    %20 = arith.mulf %18, %19 : vector<8x1xf32>
    %21 = arith.mulf %16, %16 : vector<8x128xf32>
    %cst_17 = arith.constant dense<0.000000e+00> : vector<8xf32>
    %22 = vector.multi_reduction <add>, %21, %cst_17 [1] : vector<8x128xf32> to vector<8xf32>
    %23 = vector.shape_cast %22 : vector<8xf32> to vector<8x1xf32>
    %cst_18 = arith.constant 3.125000e-02 : f32
    %24 = vector.broadcast %cst_18 : f32 to vector<8x1xf32>
    %25 = arith.mulf %23, %24 : vector<8x1xf32>
    %26 = arith.mulf %20, %20 : vector<8x1xf32>
    %27 = arith.subf %25, %26 : vector<8x1xf32>
    %28 = vector.broadcast %20 : vector<8x1xf32> to vector<8x128xf32>
    %29 = arith.subf %16, %28 : vector<8x128xf32>
    %cst_19 = arith.constant 9.99999974E-6 : f32
    %30 = vector.broadcast %cst_19 : f32 to vector<8x1xf32>
    %31 = arith.addf %27, %30 : vector<8x1xf32>
    %32 = math.rsqrt %31 : vector<8x1xf32>
    %33 = vector.broadcast %32 : vector<8x1xf32> to vector<8x128xf32>
    %34 = arith.mulf %29, %33 : vector<8x128xf32>
    %35 = vector.broadcast %1 : vector<1x128xf32> to vector<8x128xf32>
    %36 = arith.mulf %34, %35 : vector<8x128xf32>
    %37 = vector.broadcast %2 : vector<1x128xf32> to vector<8x128xf32>
    %38 = arith.addf %36, %37 : vector<8x128xf32>
    %39 = arith.truncf %38 : vector<8x128xf32> to vector<8x128xbf16>
    %c0_20 = arith.constant 0 : index
    %c0_21 = arith.constant 0 : index
    %40 = vector.load %arg3[%c0_20, %c0_21] : memref<128x128xbf16, #tpu.memory_space<vmem>>, vector<128x128xbf16>
    %cst_22 = arith.constant dense<0.000000e+00> : vector<8x128xf32>
    %41 = tpu.matmul %39, %40, %cst_22 {dimension_numbers = #tpu.dot_dimension_numbers<[1], [0], [0], [1], [0, 0, 1, 1], [], []>} : vector<8x128xbf16>, vector<128x128xbf16>, vector<8x128xf32> -> vector<8x128xf32>
    %42 = vector.broadcast %3 : vector<1x128xf32> to vector<8x128xf32>
    %43 = arith.addf %41, %42 : vector<8x128xf32>
    %cst_23 = arith.constant 0.000000e+00 : f32
    %44 = vector.broadcast %cst_23 : f32 to vector<8x128xf32>
    %45 = arith.maximumf %43, %44 : vector<8x128xf32>
    %cst_24 = arith.constant dense<0.000000e+00> : vector<8xf32>
    %46 = vector.multi_reduction <add>, %45, %cst_24 [1] : vector<8x128xf32> to vector<8xf32>
    %47 = vector.shape_cast %46 : vector<8xf32> to vector<8x1xf32>
    %cst_25 = arith.constant 1.562500e-02 : f32
    %48 = vector.broadcast %cst_25 : f32 to vector<8x1xf32>
    %49 = arith.mulf %47, %48 : vector<8x1xf32>
    %50 = arith.mulf %45, %45 : vector<8x128xf32>
    %cst_26 = arith.constant dense<0.000000e+00> : vector<8xf32>
    %51 = vector.multi_reduction <add>, %50, %cst_26 [1] : vector<8x128xf32> to vector<8xf32>
    %52 = vector.shape_cast %51 : vector<8xf32> to vector<8x1xf32>
    %cst_27 = arith.constant 1.562500e-02 : f32
    %53 = vector.broadcast %cst_27 : f32 to vector<8x1xf32>
    %54 = arith.mulf %52, %53 : vector<8x1xf32>
    %55 = arith.mulf %49, %49 : vector<8x1xf32>
    %56 = arith.subf %54, %55 : vector<8x1xf32>
    %57 = vector.broadcast %49 : vector<8x1xf32> to vector<8x128xf32>
    %58 = arith.subf %45, %57 : vector<8x128xf32>
    %cst_28 = arith.constant 9.99999974E-6 : f32
    %59 = vector.broadcast %cst_28 : f32 to vector<8x1xf32>
    %60 = arith.addf %56, %59 : vector<8x1xf32>
    %61 = math.rsqrt %60 : vector<8x1xf32>
    %62 = vector.broadcast %61 : vector<8x1xf32> to vector<8x128xf32>
    %63 = arith.mulf %58, %62 : vector<8x128xf32>
    %64 = vector.broadcast %4 : vector<1x128xf32> to vector<8x128xf32>
    %65 = arith.mulf %63, %64 : vector<8x128xf32>
    %66 = vector.broadcast %5 : vector<1x128xf32> to vector<8x128xf32>
    %67 = arith.addf %65, %66 : vector<8x128xf32>
    %68 = arith.truncf %67 : vector<8x128xf32> to vector<8x128xbf16>
    %c0_29 = arith.constant 0 : index
    %c0_30 = arith.constant 0 : index
    %69 = vector.load %arg4[%c0_29, %c0_30] : memref<128x128xbf16, #tpu.memory_space<vmem>>, vector<128x128xbf16>
    %cst_31 = arith.constant dense<0.000000e+00> : vector<8x128xf32>
    %70 = tpu.matmul %68, %69, %cst_31 {dimension_numbers = #tpu.dot_dimension_numbers<[1], [0], [0], [1], [0, 0, 1, 1], [], []>} : vector<8x128xbf16>, vector<128x128xbf16>, vector<8x128xf32> -> vector<8x128xf32>
    %71 = vector.broadcast %6 : vector<1x128xf32> to vector<8x128xf32>
    %72 = arith.addf %70, %71 : vector<8x128xf32>
    %cst_32 = arith.constant 0.000000e+00 : f32
    %73 = vector.broadcast %cst_32 : f32 to vector<8x128xf32>
    %74 = arith.maximumf %72, %73 : vector<8x128xf32>
    %cst_33 = arith.constant dense<0.000000e+00> : vector<8xf32>
    %75 = vector.multi_reduction <add>, %74, %cst_33 [1] : vector<8x128xf32> to vector<8xf32>
    %76 = vector.shape_cast %75 : vector<8xf32> to vector<8x1xf32>
    %cst_34 = arith.constant 7.812500e-03 : f32
    %77 = vector.broadcast %cst_34 : f32 to vector<8x1xf32>
    %78 = arith.mulf %76, %77 : vector<8x1xf32>
    %79 = arith.mulf %74, %74 : vector<8x128xf32>
    %cst_35 = arith.constant dense<0.000000e+00> : vector<8xf32>
    %80 = vector.multi_reduction <add>, %79, %cst_35 [1] : vector<8x128xf32> to vector<8xf32>
    %81 = vector.shape_cast %80 : vector<8xf32> to vector<8x1xf32>
    %cst_36 = arith.constant 7.812500e-03 : f32
    %82 = vector.broadcast %cst_36 : f32 to vector<8x1xf32>
    %83 = arith.mulf %81, %82 : vector<8x1xf32>
    %84 = arith.mulf %78, %78 : vector<8x1xf32>
    %85 = arith.subf %83, %84 : vector<8x1xf32>
    %86 = vector.broadcast %78 : vector<8x1xf32> to vector<8x128xf32>
    %87 = arith.subf %74, %86 : vector<8x128xf32>
    %cst_37 = arith.constant 9.99999974E-6 : f32
    %88 = vector.broadcast %cst_37 : f32 to vector<8x1xf32>
    %89 = arith.addf %85, %88 : vector<8x1xf32>
    %90 = math.rsqrt %89 : vector<8x1xf32>
    %91 = vector.broadcast %90 : vector<8x1xf32> to vector<8x128xf32>
    %92 = arith.mulf %87, %91 : vector<8x128xf32>
    %93 = vector.broadcast %7 : vector<1x128xf32> to vector<8x128xf32>
    %94 = arith.mulf %92, %93 : vector<8x128xf32>
    %95 = vector.broadcast %8 : vector<1x128xf32> to vector<8x128xf32>
    %96 = arith.addf %94, %95 : vector<8x128xf32>
    %97 = arith.truncf %96 : vector<8x128xf32> to vector<8x128xbf16>
    %c0_38 = arith.constant 0 : index
    %c0_39 = arith.constant 0 : index
    %98 = vector.load %arg5[%c0_38, %c0_39] : memref<128x512xbf16, #tpu.memory_space<vmem>>, vector<128x512xbf16>
    %cst_40 = arith.constant dense<0.000000e+00> : vector<8x512xf32>
    %99 = tpu.matmul %97, %98, %cst_40 {dimension_numbers = #tpu.dot_dimension_numbers<[1], [0], [0], [1], [0, 0, 1, 1], [], []>} : vector<8x128xbf16>, vector<128x512xbf16>, vector<8x512xf32> -> vector<8x512xf32>
    %100 = vector.broadcast %9 : vector<1x512xf32> to vector<8x512xf32>
    %101 = arith.addf %99, %100 : vector<8x512xf32>
    %cst_41 = arith.constant 5.000000e-01 : f32
    %102 = vector.broadcast %cst_41 : f32 to vector<8x512xf32>
    %103 = arith.mulf %102, %101 : vector<8x512xf32>
    %104 = math.tanh %103 : vector<8x512xf32>
    %cst_42 = arith.constant 1.000000e+00 : f32
    %105 = vector.broadcast %cst_42 : f32 to vector<8x512xf32>
    %106 = arith.addf %104, %105 : vector<8x512xf32>
    %cst_43 = arith.constant 5.000000e-01 : f32
    %107 = vector.broadcast %cst_43 : f32 to vector<8x512xf32>
    %108 = arith.mulf %107, %106 : vector<8x512xf32>
    %109 = arith.truncf %108 : vector<8x512xf32> to vector<8x512xbf16>
    %c0_44 = arith.constant 0 : index
    %c0_45 = arith.constant 0 : index
    %110 = vector.load %arg7[%c0_44, %c0_45] : memref<8x512xbf16, #tpu.memory_space<vmem>>, vector<8x512xbf16>
    tpu.vector_store %arg7[%c0_44, %c0_45], %109 {strides = array<i32>} : memref<8x512xbf16, #tpu.memory_space<vmem>>, vector<8x512xbf16>,
    return
  }
  func.func @transform_0(%arg0: i32) -> (i32, i32) {
    %c0_i32 = arith.constant 0 : i32
    %c0_i32_0 = arith.constant 0 : i32
    return %arg0, %c0_i32 : i32, i32
  }
  func.func @transform_1(%arg0: i32) -> (i32, i32) {
    %c0_i32 = arith.constant 0 : i32
    %c0_i32_0 = arith.constant 0 : i32
    %c0_i32_1 = arith.constant 0 : i32
    return %c0_i32, %c0_i32_0 : i32, i32
  }
  func.func @transform_2(%arg0: i32) -> (i32, i32) {
    %c0_i32 = arith.constant 0 : i32
    %c0_i32_0 = arith.constant 0 : i32
    %c0_i32_1 = arith.constant 0 : i32
    return %c0_i32, %c0_i32_0 : i32, i32
  }
  func.func @transform_3(%arg0: i32) -> (i32, i32) {
    %c0_i32 = arith.constant 0 : i32
    %c0_i32_0 = arith.constant 0 : i32
    %c0_i32_1 = arith.constant 0 : i32
    return %c0_i32, %c0_i32_0 : i32, i32
  }
  func.func @transform_4(%arg0: i32) -> (i32, i32) {
    %c0_i32 = arith.constant 0 : i32
    %c0_i32_0 = arith.constant 0 : i32
    %c0_i32_1 = arith.constant 0 : i32
    return %c0_i32, %c0_i32_0 : i32, i32
  }
  func.func @transform_5(%arg0: i32) -> (i32, i32) {
    %c0_i32 = arith.constant 0 : i32
    %c0_i32_0 = arith.constant 0 : i32
    %c0_i32_1 = arith.constant 0 : i32
    return %c0_i32, %c0_i32_0 : i32, i32
  }
  func.func @transform_6(%arg0: i32) -> (i32, i32) {
    %c0_i32 = arith.constant 0 : i32
    %c0_i32_0 = arith.constant 0 : i32
    return %arg0, %c0_i32 : i32, i32
  }
}

</mosaic_0001>

<bundles_post_ra>
// kernel: tpu_custom_call.1
= control target key start
LH: loop header
LB: loop body
LE: loop exit
PB: predicated region body
PF: predicated region fallthrough
CT: control target
= control target key end

     0   :  { %11 = vsyncpa [#allocation3], 0  ;;  %s1247_s0 = inlined_call_operand.hbm [shape: bf16[8,32], index: 0, kind: input, shape index: {}]   ;;  %s1248_s1 = inlined_call_operand.hbm [shape: bf16[32,128], index: 1, kind: input, shape index: {}]   ;;  %s1249_s2 = inlined_call_operand.hbm [shape: bf16[128,128], index: 2, kind: input, shape index: {}]   ;;  %s1250_s3 = inlined_call_operand.hbm [shape: bf16[128,128], index: 3, kind: input, shape index: {}]   ;;  %s1251_s4 = inlined_call_operand.hbm [shape: bf16[128,512], index: 4, kind: input, shape index: {}]   ;;  %s1252_s5 = inlined_call_operand.hbm [shape: f32[1,1664], index: 5, kind: input, shape index: {}]   ;;  %s1253_s6 = inlined_call_operand.hbm [shape: bf16[8,512], index: 6, kind: output, shape index: {}]  }
   0x1   :  { %12 = vsyncpa [#allocation6], 0 }
   0x2   :  { %13 = vsyncpa [#allocation9], 0 }
   0x3   :  { %14 = vsyncpa [#allocation12], 0  ;;  %s31_s23 = sshll.u32 %s1248_s1, 4  ;;  %s32_s23 = int_to_ptr.hbm [resolvable:$true] %s31_s23 }
   0x4   :  { %15 = vsyncpa [#allocation4], 0  ;;  %s1174_s24 = smov [#allocation5]   ;;  %s57_s28 = sshll.u32 %s1250_s3, 4  ;;  %s58_s28 = int_to_ptr.hbm [resolvable:$true] %s57_s28 }
   0x5   :  { %s33_s25 = sshll.u32 %s1174_s24, 4  ;;  %s1175_s29 = smov 64   ;;  %s34_s25 = int_to_ptr.vmem [resolvable:$true] %s33_s25 }
   0x6   :  { %s1176_s30 = smov 4   ;;  %s1177_s7 = smov [#allocation8]  }
   0x7   :  { %39 = dma.hbm_to_vmem [thread:$0]  %s32_s23, 256, %s34_s25, [#allocation6], %s1175_s29, %s1175_s29, %s1176_s30  }
   0x8   :  { %s59_s8 = sshll.u32 %s1177_s7, 4  ;;  %s21_s11 = sshll.u32 %s1247_s0, 4  ;;  %s60_s8 = int_to_ptr.vmem [resolvable:$true] %s59_s8  ;;  %s22_s11 = int_to_ptr.hbm [resolvable:$true] %s21_s11 }
   0x9   :  { %65 = dma.hbm_to_vmem [thread:$0]  %s58_s28, 1024, %s60_s8, [#allocation9], %s1175_s29, %s1175_s29, %s1176_s30  }
   0xa   :  { %s44_s13 = sshll.u32 %s1249_s2, 4  ;;  %s1178_s14 = smov [#allocation2]   ;;  %s45_s13 = int_to_ptr.hbm [resolvable:$true] %s44_s13 }
   0xb   :  { %s23_s15 = sshll.u32 %s1178_s14, 4  ;;  %s1179_s3 = smov [#allocation7]   ;;  %s24_s15 = int_to_ptr.vmem [resolvable:$true] %s23_s15 }
   0xc   :  { %26 = dma.hbm_to_vmem [thread:$0]  %s22_s11, 64, %s24_s15, [#allocation3]  }
   0xd   :  { %s46_s16 = sshll.u32 %s1179_s3, 4  ;;  %s70_s19 = sshll.u32 %s1251_s4, 4  ;;  %s47_s16 = int_to_ptr.vmem [resolvable:$true] %s46_s16  ;;  %s71_s19 = int_to_ptr.hbm [resolvable:$true] %s70_s19 }
   0xe   :  { %52 = dma.hbm_to_vmem [thread:$0]  %s45_s13, 1024, %s47_s16, [#allocation6], %s1175_s29, %s1175_s29, %s1176_s30  }
   0xf   :  { %s1180_s0 = smov [#allocation10]   ;;  %s84_s2 = sshll.u32 %s1252_s5, 4  ;;  %s85_s2 = int_to_ptr.hbm [resolvable:$true] %s84_s2 }
  0x10   :  { %s72_s20 = sshll.u32 %s1180_s0, 4  ;;  %s1181_s23 = smov 256   ;;  %s73_s20 = int_to_ptr.vmem [resolvable:$true] %s72_s20 }
  0x11   :  { %s1182_s24 = smov 16   ;;  %s1183_s25 = smov [#allocation11]  }
  0x12   :  { %78 = dma.hbm_to_vmem [thread:$0]  %s71_s19, 4096, %s73_s20, [#allocation9], %s1181_s23, %s1181_s23, %s1182_s24  }
  0x13   :  { %s86_s26 = sshll.u32 %s1183_s25, 4  ;;  %s87_s26 = int_to_ptr.vmem [resolvable:$true] %s86_s26 }
  0x14   :  { %89 = dma.hbm_to_vmem [thread:$0]  %s85_s2, 208, %s87_s26, [#allocation12]  }
  0x15   :  { %1164 = dma.done.wait [#allocation3], 64  }
  0x16   :  { %1165 = vsyncadd [#allocation3], 4294967232 }
  0x17   :  { %1166 = dma.done.wait [#allocation6], 1280  }
  0x18   :  { %1167 = vsyncadd [#allocation6], 4294966016 }
  0x19   :  { %1168 = dma.done.wait [#allocation9], 5120  }
  0x1a   :  { %1169 = vsyncadd [#allocation9], 4294962176 }
  0x1b   :  { %1170 = dma.done.wait [#allocation12], 208  }
  0x1c   :  { %1171 = vsyncadd [#allocation12], 4294967088  ;;  %v913_v0 = vld [vmem:[#allocation5 + $0x8] sm:$0xff]  ;;  %v912_v1 = vld [vmem:[#allocation5] sm:$0xff]  ;;  %vm145_vm0 = vcmask 261120   ;;  %s1184_s4 = smov [#allocation13]  }
  0x1d   :  { %155 = vmatpush.bf16.msra.mxu0 %v913_v0  ;;  %v125_v2 = vld [vmem:[#allocation2] sm:$0xf]  ;;  %v973_v3 = vld [vmem:[#allocation11] ss:$0 sm:$0xff]  ;;  %v921_v9 = vld [vmem:[#allocation7 + $0x38] sm:$0xff]  ;;  %s696_s5 = sshll.u32 %s1184_s4, 4  ;;  %s697_s5 = int_to_ptr.vmem [resolvable:$true] %s696_s5 }
  0x1e   :  { %261 = vmatpush.bf16.msra.mxu1 %v921_v9  ;;  %v920_v10 = vld [vmem:[#allocation7 + $0x30] sm:$0xff]  ;;  %v919_v11 = vld [vmem:[#allocation7 + $0x28] sm:$0xff]  ;;  %v918_v12 = vld [vmem:[#allocation7 + $0x20] sm:$0xff]  ;;  %s698_s29 = sshll.u32 %s1253_s6, 4  ;;  %s699_s29 = int_to_ptr.hbm [resolvable:$true] %s698_s29 }
  0x1f   :  { %v917_v13 = vld [vmem:[#allocation7 + $0x18] sm:$0xff]  ;;  %v916_v14 = vld [vmem:[#allocation7 + $0x10] sm:$0xff]  ;;  %v915_v15 = vld [vmem:[#allocation7 + $0x8] sm:$0xff] }
  0x20   :  { %v914_v17 = vld [vmem:[#allocation7] sm:$0xff]  ;;  %v929_v44 = vld [vmem:[#allocation8 + $0x38] sm:$0xff]  ;;  %v928_v45 = vld [vmem:[#allocation8 + $0x30] sm:$0xff] }
  0x21   :  { %156 = vmatpush.bf16.msra.mxu0 %v912_v1  ;;  %v974_v31 = vld [vmem:[#allocation11 + $0x1] ss:$0 sm:$0xff]  ;;  %v975_v34 = vld [vmem:[#allocation11 + $0x2] ss:$0 sm:$0xff]  ;;  %v976_v38 = vld [vmem:[#allocation11 + $0x3] ss:$0 sm:$0xff]  ;;  %373 = vmatpush.bf16.msra.mxu2 %v929_v44 }
  0x22   :  { %262 = vmatpush.bf16.msra.mxu1 %v920_v10  ;;  %v927_v46 = vld [vmem:[#allocation8 + $0x28] sm:$0xff]  ;;  %v926_v47 = vld [vmem:[#allocation8 + $0x20] sm:$0xff]  ;;  %v925_v48 = vld [vmem:[#allocation8 + $0x18] sm:$0xff] }
  0x23   :  { %v924_v49 = vld [vmem:[#allocation8 + $0x10] sm:$0xff]  ;;  %v923_v50 = vld [vmem:[#allocation8 + $0x8] sm:$0xff]  ;;  %v922_v52 = vld [vmem:[#allocation8] sm:$0xff] }
  0x24   :  { %719 = vmatmul.msk.bf16.vlgmr.msra.gmra.mxu0 %vm145_vm0, %v125_v2  ;;  %v977_v2 = vld [vmem:[#allocation11 + $0x4] ss:$0 sm:$0xff]  ;;  %v979_v9 = vld [vmem:[#allocation11 + $0x6] ss:$0 sm:$0xff]  ;;  %v874_v44 = vld [vmem:[#allocation10 + $0xa8] sm:$0xf] }
  0x25   :  { %374 = vmatpush.bf16.msra.mxu2 %v928_v45  ;;  %v953_v45 = vld [vmem:[#allocation10 + $0xb4] sm:$0xf0] }
  0x26   :  { %263 = vmatpush.bf16.msra.mxu1 %v919_v11 }
  0x29   :  { %375 = vmatpush.bf16.msra.mxu2 %v927_v46 }
  0x2a   :  { %264 = vmatpush.bf16.msra.mxu1 %v918_v12 }
  0x2d   :  { %376 = vmatpush.bf16.msra.mxu2 %v926_v47  ;;  %v875_v47 = vor.u32 %v953_v45, %v874_v44 }
  0x2e   :  { %265 = vmatpush.bf16.msra.mxu1 %v917_v13 }
  0x31   :  { %377 = vmatpush.bf16.msra.mxu2 %v925_v48  ;;  %v951_v48 = vld [vmem:[#allocation10 + $0xac] sm:$0xf] }
  0x32   :  { %266 = vmatpush.bf16.msra.mxu1 %v916_v14 }
  0x35   :  { %378 = vmatpush.bf16.msra.mxu2 %v924_v49  ;;  %v876_v49 = vld [vmem:[#allocation10 + $0xb8] sm:$0xf0] }
  0x36   :  { %267 = vmatpush.bf16.msra.mxu1 %v915_v15  ;;  %v898_v15 = vld [vmem:[#allocation10 + $0xe0] sm:$0xf] }
  0x39   :  { %379 = vmatpush.bf16.msra.mxu2 %v923_v50  ;;  %v879_v50 = vor.u32 %v951_v48, %v876_v49 }
  0x3a   :  { %268 = vmatpush.bf16.msra.mxu1 %v914_v17  ;;  %v958_v17 = vld [vmem:[#allocation10 + $0xe4] sm:$0xf] }
  0x3d   :  { %380 = vmatpush.bf16.msra.mxu2 %v922_v52  ;;  %v948_v52 = vld [vmem:[#allocation10 + $0x8c] sm:$0xf0] }
  0xa1   :  { %v158_v4 = vpop.f32.mrf.mxu0 }
  0xa2   :  { %v159_v5 = vadd.f32 %v973_v3, %v158_v4 }
  0xa4   :  { %v162_v6 = vmax.f32 %v159_v5, 0.0  ;;  %v978_v5 = vld [vmem:[#allocation11 + $0x5] ss:$0 sm:$0xff] }
  0xa6   :  { %163 = vadd.xlane.f32.xlu0 %v162_v6  ;;  %v166_v8 = vmul.f32 %v162_v6, %v162_v6 }
  0xa9   :  { %v160_v7 = vpop.f32.mrf.mxu0 }
  0xae   :  { %167 = vadd.xlane.f32.xlu0 %v166_v8 }
 0x119   :  { %v164_v16 = vpop.xlane.xlu0 %163 }
 0x11a   :  { %v165_v18 = vmul.f32 0.03125, %v164_v16  ;;  %v960_v16 = vld [vmem:[#allocation10 + $0xec] sm:$0xf0] }
 0x11c   :  { %v170_v20 = vmul.f32 %v165_v18, %v165_v18  ;;  %v172_v30 = vsub.f32 %v162_v6, %v165_v18  ;;  %v899_v18 = vor.u32 %v960_v16, %v898_v15  ;;  %v820_v16 = vld [vmem:[#allocation10 + $0x50] sm:$0xf0] }
 0x11e   :  { %619 = vmatpush.bf16.msra.mxu3 %v899_v18  ;;  %v941_v18 = vld [vmem:[#allocation10 + $0x54] sm:$0xf0] }
 0x121   :  { %v168_v19 = vpop.xlane.xlu0 %167 }
 0x122   :  { %v169_v21 = vmul.f32 0.03125, %v168_v19  ;;  %v900_v19 = vld [vmem:[#allocation10 + $0xf0] sm:$0xf0] }
 0x124   :  { %v171_v22 = vsub.f32 %v169_v21, %v170_v20  ;;  %v906_v20 = vld [vmem:[#allocation10 + $0xe8] sm:$0xf]  ;;  %v961_v21 = vld [vmem:[#allocation10 + $0xf4] sm:$0xf0] }
 0x126   :  { %v173_v23 = vadd.f32 1e-05, %v171_v22  ;;  %v903_v22 = vor.u32 %v958_v17, %v900_v19  ;;  %v826_v17 = vld [vmem:[#allocation10 + $0x48] sm:$0xf] }
 0x128   :  { %982 = vrsqrt.f32 %v173_v23  ;;  %vm180_vm2 = vweird.f32 %v173_v23  ;;  %632 = vmatpush.bf16.msrb.mxu0 %v903_v22  ;;  %v828_v22 = vld [vmem:[#allocation10 + $0x58] sm:$0xf0] }
 0x12e   :  { %v983_v24 = vpop.eup %982 }
 0x12f   :  { %v175_v25 = vmul.f32 %v983_v24, %v173_v23  ;;  %vm181_vm1 = vweird.f32 %v983_v24  ;;  %v907_v23 = vor.u32 %v961_v21, %v906_v20  ;;  %v827_v20 = vor.u32 %v941_v18, %v826_v17  ;;  %v939_v21 = vld [vmem:[#allocation10 + $0x4c] sm:$0xf] }
 0x130   :  { %vm182_vm3 = vmor %vm180_vm2, %vm181_vm1 }
 0x131   :  { %v176_v26 = vmul.f32 %v983_v24, %v175_v25  ;;  %v908_v25 = vld [vmem:[#allocation10 + $0xf8] sm:$0xf0]  ;;  %645 = vmatpush.bf16.msrb.mxu1 %v907_v23  ;;  %v831_v23 = vor.u32 %v939_v21, %v828_v22 }
 0x133   :  { %v177_v27 = vmul.f32 0.5, %v176_v26 }
 0x135   :  { %v178_v28 = vsub.f32 1.5, %v177_v27  ;;  %v882_v27 = vld [vmem:[#allocation10 + $0xc0] sm:$0xf] }
 0x137   :  { %v179_v29 = vmul.f32 %v983_v24, %v178_v28  ;;  %v956_v28 = vld [vmem:[#allocation10 + $0xcc] sm:$0xf0] }
 0x139   :  { %v183_v32 = vsel %vm182_vm3, %v983_v24, %v179_v29  ;;  %v959_v24 = vld [vmem:[#allocation10 + $0xec] sm:$0xf]  ;;  %v954_v29 = vld [vmem:[#allocation10 + $0xc4] sm:$0xf] }
 0x13a   :  { %v184_v33 = vmul.f32 %v183_v32, %v172_v30  ;;  %v911_v26 = vor.u32 %v959_v24, %v908_v25  ;;  %v883_v30 = vor.u32 %v956_v28, %v882_v27  ;;  %v890_v32 = vld [vmem:[#allocation10 + $0xc8] sm:$0xf]  ;;  %v802_v24 = vld [vmem:[#allocation10 + $0x20] sm:$0xf]  ;;  %v936_v25 = vld [vmem:[#allocation10 + $0x2c] sm:$0xf0] }
 0x13b   :  { %v803_v28 = vor.u32 %v936_v25, %v802_v24 }
 0x13c   :  { %v188_v35 = vmul.f32 %v974_v31, %v184_v33  ;;  %658 = vmatpush.bf16.msrb.mxu2 %v911_v26  ;;  %v884_v31 = vld [vmem:[#allocation10 + $0xd0] sm:$0xf0]  ;;  %v957_v33 = vld [vmem:[#allocation10 + $0xd4] sm:$0xf0]  ;;  %620 = vmatpush.bf16.msra.mxu3 %v883_v30  ;;  %v934_v26 = vld [vmem:[#allocation10 + $0x24] sm:$0xf] }
 0x13d   :  { %v810_v30 = vld [vmem:[#allocation10 + $0x28] sm:$0xf] }
 0x13e   :  { %v192_v36 = vadd.f32 %v975_v34, %v188_v35  ;;  %v887_v34 = vor.u32 %v954_v29, %v884_v31  ;;  %v891_v35 = vor.u32 %v957_v33, %v890_v32  ;;  %v804_v29 = vld [vmem:[#allocation10 + $0x30] sm:$0xf0]  ;;  %v937_v31 = vld [vmem:[#allocation10 + $0x34] sm:$0xf0] }
 0x13f   :  { %v807_v32 = vor.u32 %v934_v26, %v804_v29  ;;  %v811_v33 = vor.u32 %v937_v31, %v810_v30 }
 0x140   :  { %v193_v37 = vpack.c.bf16 %v192_v36, %v192_v36  ;;  %v955_v36 = vld [vmem:[#allocation10 + $0xcc] sm:$0xf]  ;;  %633 = vmatpush.bf16.msrb.mxu0 %v887_v34  ;;  %646 = vmatpush.bf16.msrb.mxu1 %v891_v35  ;;  %v812_v35 = vld [vmem:[#allocation10 + $0x38] sm:$0xf0] }
 0x141   :  { %v935_v34 = vld [vmem:[#allocation10 + $0x2c] sm:$0xf] }
 0x142   :  { %269 = vmatmul.bf16.vlgmr.msra.gmra.mxu1 %v193_v37  ;;  %v892_v37 = vld [vmem:[#allocation10 + $0xd8] sm:$0xf0] }
 0x144   :  { %647 = vmatpush.bf16.msrb.mxu1 %v875_v47  ;;  %v796_v47 = vld [vmem:[#allocation10 + $0x18] sm:$0xf0] }
 0x1bf   :  { %v270_v39 = vpop.f32.mrf.mxu1 }
 0x1c0   :  { %v271_v40 = vadd.f32 %v976_v38, %v270_v39  ;;  %v895_v38 = vor.u32 %v955_v36, %v892_v37  ;;  %v866_v39 = vld [vmem:[#allocation10 + $0xa0] sm:$0xf]  ;;  %v815_v36 = vor.u32 %v935_v34, %v812_v35 }
 0x1c1   :  { %v786_v37 = vld [vmem:[#allocation10] sm:$0xf] }
 0x1c2   :  { %v274_v41 = vmax.f32 %v271_v40, 0.0  ;;  %v952_v40 = vld [vmem:[#allocation10 + $0xac] sm:$0xf0]  ;;  %659 = vmatpush.bf16.msrb.mxu2 %v895_v38 }
 0x1c3   :  { %v932_v38 = vld [vmem:[#allocation10 + $0xc] sm:$0xf0] }
 0x1c4   :  { %275 = vadd.xlane.f32.xlu1 %v274_v41  ;;  %v278_v43 = vmul.f32 %v274_v41, %v274_v41 }
 0x1c6   :  { %660 = vmatpush.bf16.msrb.mxu2 %v879_v50 }
 0x1c7   :  { %v272_v42 = vpop.f32.mrf.mxu1 }
 0x1c8   :  { %v867_v42 = vor.u32 %v952_v40, %v866_v39  ;;  %v930_v39 = vld [vmem:[#allocation10 + $0x4] sm:$0xf]  ;;  %v787_v40 = vor.u32 %v932_v38, %v786_v37 }
 0x1ca   :  { %621 = vmatpush.bf16.msra.mxu3 %v867_v42  ;;  %v794_v42 = vld [vmem:[#allocation10 + $0x8] sm:$0xf] }
 0x1cc   :  { %279 = vadd.xlane.f32.xlu1 %v278_v43  ;;  %v868_v43 = vld [vmem:[#allocation10 + $0xb0] sm:$0xf0] }
 0x237   :  { %v276_v51 = vpop.xlane.xlu1 %275 }
 0x238   :  { %v277_v53 = vmul.f32 0.015625, %v276_v51  ;;  %v850_v51 = vld [vmem:[#allocation10 + $0x80] sm:$0xf] }
 0x23a   :  { %v282_v55 = vmul.f32 %v277_v53, %v277_v53  ;;  %v284_v1 = vsub.f32 %v274_v41, %v277_v53  ;;  %v950_v41 = vld [vmem:[#allocation10 + $0xa4] sm:$0xf] }
 0x23b   :  { %v871_v46 = vor.u32 %v950_v41, %v868_v43  ;;  %v946_v53 = vld [vmem:[#allocation10 + $0x84] sm:$0xf]  ;;  %v788_v41 = vld [vmem:[#allocation10 + $0x10] sm:$0xf0]  ;;  %v933_v43 = vld [vmem:[#allocation10 + $0x14] sm:$0xf0] }
 0x23c   :  { %v791_v44 = vor.u32 %v930_v39, %v788_v41  ;;  %v795_v45 = vor.u32 %v933_v43, %v794_v42 }
 0x23d   :  { %634 = vmatpush.bf16.msrb.mxu0 %v871_v46  ;;  %v931_v46 = vld [vmem:[#allocation10 + $0xc] sm:$0xf] }
 0x23e   :  { %v799_v49 = vor.u32 %v931_v46, %v796_v47 }
 0x23f   :  { %v280_v54 = vpop.xlane.xlu1 %279 }
 0x240   :  { %v281_v56 = vmul.f32 0.015625, %v280_v54  ;;  %v851_v54 = vor.u32 %v948_v52, %v850_v51 }
 0x242   :  { %v283_v57 = vsub.f32 %v281_v56, %v282_v55  ;;  %v852_v55 = vld [vmem:[#allocation10 + $0x90] sm:$0xf0]  ;;  %v858_v56 = vld [vmem:[#allocation10 + $0x88] sm:$0xf]  ;;  %622 = vmatpush.bf16.msra.mxu3 %v851_v54 }
 0x244   :  { %v285_v58 = vadd.f32 1e-05, %v283_v57  ;;  %v949_v57 = vld [vmem:[#allocation10 + $0x94] sm:$0xf0] }
 0x246   :  { %984 = vrsqrt.f32 %v285_v58  ;;  %vm292_vm5 = vweird.f32 %v285_v58 }
 0x24c   :  { %v985_v59 = vpop.eup %984 }
 0x24d   :  { %v287_v60 = vmul.f32 %v985_v59, %v285_v58  ;;  %vm293_vm4 = vweird.f32 %v985_v59  ;;  %v855_v58 = vor.u32 %v946_v53, %v852_v55 }
 0x24e   :  { %vm294_vm6 = vmor %vm292_vm5, %vm293_vm4 }
 0x24f   :  { %v288_v61 = vmul.f32 %v985_v59, %v287_v60  ;;  %v947_v60 = vld [vmem:[#allocation10 + $0x8c] sm:$0xf]  ;;  %635 = vmatpush.bf16.msrb.mxu0 %v855_v58 }
 0x251   :  { %v289_v62 = vmul.f32 0.5, %v288_v61  ;;  %v860_v61 = vld [vmem:[#allocation10 + $0x98] sm:$0xf0] }
 0x253   :  { %v290_v63 = vsub.f32 1.5, %v289_v62  ;;  %v863_v62 = vor.u32 %v947_v60, %v860_v61 }
 0x255   :  { %v291_v0 = vmul.f32 %v985_v59, %v290_v63  ;;  %v834_v63 = vld [vmem:[#allocation10 + $0x60] sm:$0xf]  ;;  %661 = vmatpush.bf16.msrb.mxu2 %v863_v62  ;;  %v980_v62 = vld [vmem:[#allocation11 + $0x7] ss:$0 sm:$0xff] }
 0x257   :  { %v295_v3 = vsel %vm294_vm6, %v985_v59, %v291_v0  ;;  %v859_v59 = vor.u32 %v949_v57, %v858_v56  ;;  %v944_v0 = vld [vmem:[#allocation10 + $0x6c] sm:$0xf0] }
 0x258   :  { %v296_v4 = vmul.f32 %v295_v3, %v284_v1  ;;  %v942_v1 = vld [vmem:[#allocation10 + $0x64] sm:$0xf]  ;;  %v836_v3 = vld [vmem:[#allocation10 + $0x70] sm:$0xf0] }
 0x259   :  { %648 = vmatpush.bf16.msrb.mxu1 %v859_v59 }
 0x25a   :  { %v300_v6 = vmul.f32 %v977_v2, %v296_v4  ;;  %v835_v2 = vor.u32 %v944_v0, %v834_v63  ;;  %v842_v4 = vld [vmem:[#allocation10 + $0x68] sm:$0xf] }
 0x25c   :  { %v304_v7 = vadd.f32 %v978_v5, %v300_v6  ;;  %v945_v5 = vld [vmem:[#allocation10 + $0x74] sm:$0xf0]  ;;  %v839_v6 = vor.u32 %v942_v1, %v836_v3  ;;  %623 = vmatpush.bf16.msra.mxu3 %v835_v2  ;;  %v981_v1 = vld [vmem:[#allocation11 + $0x8] ss:$0 sm:$0xff] }
 0x25e   :  { %v305_v8 = vpack.c.bf16 %v304_v7, %v304_v7  ;;  %v843_v7 = vor.u32 %v945_v5, %v842_v4  ;;  %636 = vmatpush.bf16.msrb.mxu0 %v839_v6  ;;  %v124_v5 = vld [vmem:[#allocation11 + $0x9] sm:$0xf] }
 0x25f   :  { %v452_v6 = vperm.slane %v124_v5, 1 }
 0x260   :  { %381 = vmatmul.bf16.vlgmr.msra.gmra.mxu2 %v305_v8  ;;  %v943_v8 = vld [vmem:[#allocation10 + $0x6c] sm:$0xf]  ;;  %649 = vmatpush.bf16.msrb.mxu1 %v843_v7  ;;  %v453_v7 = vperm.slane %v124_v5, 2 }
 0x264   :  { %650 = vmatpush.bf16.msrb.mxu1 %v827_v20 }
 0x268   :  { %651 = vmatpush.bf16.msrb.mxu1 %v811_v33 }
 0x26c   :  { %652 = vmatpush.bf16.msrb.mxu1 %v795_v45 }
 0x2e3   :  { %v382_v10 = vpop.f32.mrf.mxu2 }
 0x2e4   :  { %v383_v11 = vadd.f32 %v979_v9, %v382_v10  ;;  %v844_v9 = vld [vmem:[#allocation10 + $0x78] sm:$0xf0] }
 0x2e5   :  { %v847_v10 = vor.u32 %v943_v8, %v844_v9 }
 0x2e6   :  { %v1238_v12 = vmax.f32 %v383_v11, 0.0  ;;  %v818_v11 = vld [vmem:[#allocation10 + $0x40] sm:$0xf] }
 0x2e7   :  { %662 = vmatpush.bf16.msrb.mxu2 %v847_v10 }
 0x2e8   :  { %387 = vadd.xlane.f32.xlu2 %v1238_v12  ;;  %v390_v14 = vmul.f32 %v1238_v12, %v1238_v12 }
 0x2eb   :  { %v384_v13 = vpop.f32.mrf.mxu2  ;;  %663 = vmatpush.bf16.msrb.mxu2 %v831_v23 }
 0x2ec   :  { %v940_v13 = vld [vmem:[#allocation10 + $0x4c] sm:$0xf0] }
 0x2ed   :  { %v819_v15 = vor.u32 %v940_v13, %v818_v11  ;;  %v451_v13 = vperm.slane %v124_v5, 0 }
 0x2ef   :  { %624 = vmatpush.bf16.msra.mxu3 %v819_v15  ;;  %664 = vmatpush.bf16.msrb.mxu2 %v815_v36  ;;  %v454_v15 = vperm.slane %v124_v5, 3 }
 0x2f0   :  { %391 = vadd.xlane.f32.xlu2 %v390_v14  ;;  %v938_v14 = vld [vmem:[#allocation10 + $0x44] sm:$0xf] }
 0x2f1   :  { %v823_v19 = vor.u32 %v938_v14, %v820_v16 }
 0x2f3   :  { %637 = vmatpush.bf16.msrb.mxu0 %v823_v19  ;;  %625 = vmatpush.bf16.msra.mxu3 %v803_v28 }
 0x2f4   :  { %665 = vmatpush.bf16.msrb.mxu2 %v799_v49 }
 0x2f7   :  { %638 = vmatpush.bf16.msrb.mxu0 %v807_v32  ;;  %626 = vmatpush.bf16.msra.mxu3 %v787_v40 }
 0x2fb   :  { %639 = vmatpush.bf16.msrb.mxu0 %v791_v44 }
 0x35b   :  { %v388_v27 = vpop.xlane.xlu2 %387 }
 0x35c   :  { %v389_v48 = vmul.f32 0.0078125, %v388_v27 }
 0x35e   :  { %v394_v51 = vmul.f32 %v389_v48, %v389_v48  ;;  %v396_v61 = vsub.f32 %v1238_v12, %v389_v48 }
 0x363   :  { %v392_v50 = vpop.xlane.xlu2 %391 }
 0x364   :  { %v393_v52 = vmul.f32 0.0078125, %v392_v50 }
 0x366   :  { %v395_v53 = vsub.f32 %v393_v52, %v394_v51 }
 0x368   :  { %v397_v54 = vadd.f32 1e-05, %v395_v53 }
 0x36a   :  { %986 = vrsqrt.f32 %v397_v54  ;;  %vm404_vm8 = vweird.f32 %v397_v54 }
 0x370   :  { %v987_v55 = vpop.eup %986 }
 0x371   :  { %v399_v56 = vmul.f32 %v987_v55, %v397_v54  ;;  %vm405_vm7 = vweird.f32 %v987_v55 }
 0x372   :  { %vm406_vm9 = vmor %vm404_vm8, %vm405_vm7 }
 0x373   :  { %v400_v57 = vmul.f32 %v987_v55, %v399_v56 }
 0x375   :  { %v401_v58 = vmul.f32 0.5, %v400_v57 }
 0x377   :  { %v402_v59 = vsub.f32 1.5, %v401_v58 }
 0x379   :  { %v403_v60 = vmul.f32 %v987_v55, %v402_v59 }
 0x37b   :  { %v407_v63 = vsel %vm406_vm9, %v987_v55, %v403_v60 }
 0x37c   :  { %v408_v0 = vmul.f32 %v407_v63, %v396_v61 }
 0x37e   :  { %v412_v2 = vmul.f32 %v980_v62, %v408_v0 }
 0x380   :  { %v416_v3 = vadd.f32 %v981_v1, %v412_v2 }
 0x382   :  { %v417_v4 = vpack.c.bf16 %v416_v3, %v416_v3 }
 0x384   :  { %627 = vmatmul.bf16.vlgmr.msra.gmra.mxu3 %v417_v4  ;;  %640 = vmatmul.bf16.vlgmr.msrb.gmra.mxu0 %v417_v4 }
 0x385   :  { %653 = vmatmul.bf16.vlgmr.msrb.gmra.mxu1 %v417_v4  ;;  %666 = vmatmul.bf16.vlgmr.msrb.gmra.mxu2 %v417_v4 }
 0x401   :  { %v641_v8 = vpop.f32.mrf.mxu0 }
 0x402   :  { %v642_v9 = vadd.f32 %v641_v8, %v452_v6  ;;  %v654_v10 = vpop.f32.mrf.mxu1 }
 0x403   :  { %v655_v11 = vadd.f32 %v654_v10, %v453_v7 }
 0x404   :  { %v672_v12 = vmul.f32 0.5, %v642_v9 }
 0x405   :  { %v673_v14 = vmul.f32 0.5, %v655_v11 }
 0x406   :  { %988 = vtanh.f32 %v672_v12 }
 0x407   :  { %v628_v16 = vpop.f32.mrf.mxu3  ;;  %990 = vtanh.f32 %v673_v14 }
 0x408   :  { %v629_v17 = vadd.f32 %v628_v16, %v451_v13  ;;  %v667_v18 = vpop.f32.mrf.mxu2 }
 0x409   :  { %v668_v19 = vadd.f32 %v667_v18, %v454_v15  ;;  %v643_v20 = vpop.f32.mrf.mxu0 }
 0x40a   :  { %v671_v21 = vmul.f32 0.5, %v629_v17  ;;  %v656_v22 = vpop.f32.mrf.mxu1 }
 0x40b   :  { %v674_v23 = vmul.f32 0.5, %v668_v19 }
 0x40c   :  { %992 = vtanh.f32 %v671_v21  ;;  %v989_v24 = vpop.eup %988 }
 0x40d   :  { %994 = vtanh.f32 %v674_v23  ;;  %v991_v25 = vpop.eup %990  ;;  %v680_v28 = vadd.f32 1.0, %v989_v24 }
 0x40e   :  { %v681_v30 = vadd.f32 1.0, %v991_v25 }
 0x40f   :  { %v630_v26 = vpop.f32.mrf.mxu3  ;;  %v684_v34 = vmul.f32 0.5, %v680_v28 }
 0x410   :  { %v669_v27 = vpop.f32.mrf.mxu2  ;;  %v685_v36 = vmul.f32 0.5, %v681_v30 }
 0x412   :  { %v993_v29 = vpop.eup %992 }
 0x413   :  { %v995_v31 = vpop.eup %994  ;;  %v679_v32 = vadd.f32 1.0, %v993_v29 }
 0x414   :  { %v682_v33 = vadd.f32 1.0, %v995_v31 }
 0x415   :  { %v683_v35 = vmul.f32 0.5, %v679_v32 }
 0x416   :  { %v686_v37 = vmul.f32 0.5, %v682_v33 }
 0x417   :  { %v687_v38 = vpack.c.bf16 %v684_v34, %v683_v35 }
 0x418   :  { %v688_v39 = vpack.c.bf16 %v686_v37, %v685_v36 }
 0x419   :  { %689 = vst [vmem:[#allocation13] sm:$0xff] %v687_v38 }
 0x41a   :  { %690 = vst [vmem:[#allocation13 + $0x8] sm:$0xff] %v688_v39 }
 0x41b   :  { %701 = dma.vmem_to_hbm [thread:$0]  %s697_s5, 256, %s699_s29, [#allocation4]  }
 0x41c   :  { %1172 = dma.done.wait [#allocation4], 256  }
 0x41d   :  { %1173 = vsyncadd [#allocation4], 4294967040 }
 0x41e   :  { %706 = vsyncpa [#allocation3], 1 }
 0x41f   :  { %707 = vsyncpa [#allocation6], 1 }
 0x420   :  { %708 = vsyncpa [#allocation9], 1 }
 0x421   :  { %709 = vsyncpa [#allocation12], 1 }
 0x422   :  { %710 = vsyncpa [#allocation4], 1 }

</bundles_post_ra>
